<compile_context>
chip_gen: v7x
topology: tpu7x:2x2x1
jax: 0.10.0
libtpu: 0.0.40
codegen_flags: <defaults>
</compile_context>

<pallas_src>
import jax
import jax.numpy as jnp
from jax import lax
from jax.experimental import pallas as pl
from jax.experimental.pallas import tpu as pltpu


def _vmem_limit_bytes(default=64 * 1024 * 1024):
    """Generation-aware scoped-VMEM limit (~75% of physical, capped at 96 MiB)."""
    try:
        info = pltpu.get_tpu_info()
        cap = getattr(info, "vmem_capacity_bytes", None)
        if not cap:
            return default
        return int(min(cap * 3 // 4, 96 * 1024 * 1024))
    except Exception:
        return default


def _choose_blocking(N, C, HW, itemsize, target_bytes):
    """Pick (Nb, tile): an HW tile (multiple of 128 dividing HW, else full HW) and
    a batch block Nb (divisor of N) so the x block approaches `target_bytes`."""
    if HW % 128 == 0:
        cap_elems = max(128, target_bytes // (C * itemsize))
        tile = 128
        for d in range(128, HW + 1, 128):
            if HW % d == 0 and d <= cap_elems:
                tile = d
    else:
        # TODO(synk): pad HW to a multiple of 128 (with masked stats) instead of
        # taking the whole spatial extent when C*HW is large vs the VMEM budget.
        tile = HW
    block_bytes = C * tile * itemsize
    nb = 1
    for d in range(1, N + 1):
        if N % d == 0 and d * block_bytes <= target_bytes:
            nb = d
    return nb, tile


def _stats_kernel(x_ref, sum_ref, xxt_ref):
    """Per-N-block partial stats, accumulated across the hw grid axis:
       sum_{n,t} x[n,c,t] -> (C,1)   and   sum_{n,t} x[n,c,t] x[n,c',t] -> (C,C)."""
    @pl.when(pl.program_id(1) == 0)
    def _():
        sum_ref[...] = jnp.zeros_like(sum_ref)
        xxt_ref[...] = jnp.zeros_like(xxt_ref)

    x = x_ref[...]                                            # (Nb, C, tile), native dtype
    nb, _, tile = x.shape
    ones = jnp.ones((nb, tile, 1), dtype=x.dtype)
    # Per-channel sums on the MXU (no f32 upcast copy, no XLU reduction).
    s = lax.dot_general(x, ones, (((2,), (1,)), ((0,), (0,))),
                        preferred_element_type=jnp.float32)   # (Nb, C, 1)
    # Gram matrix, contracting the tile axis directly (no materialized x.T).
    g = lax.dot_general(x, x, (((2,), (2,)), ((0,), (0,))),
                        preferred_element_type=jnp.float32)   # (Nb, C, C)
    sum_ref[...] += jnp.sum(s, axis=0)
    xxt_ref[...] += jnp.sum(g, axis=0)


def _whiten_kernel(wm_ref, bias_ref, x_ref, o_ref):
    """xn = wm @ x - bias, with bias = wm @ mean (centering fused); batched over Nb."""
    x = x_ref[...]                                            # (Nb, C, tile), native dtype
    nb = x.shape[0]
    wm = jnp.broadcast_to(wm_ref[...], (nb, wm_ref.shape[0], wm_ref.shape[1]))
    y = lax.dot_general(wm, x, (((2,), (1,)), ((0,), (0,))),
                        preferred_element_type=jnp.float32)   # (Nb, C, tile), f32
    o_ref[...] = (y - bias_ref[...]).astype(o_ref.dtype)


def _newton_schulz(sigma, t):
    """wm = sigma^{-1/2} via Newton-Schulz; plain JAX (CxC is tiny)."""
    C = sigma.shape[0]
    eye = jnp.eye(C, dtype=jnp.float32)
    r = 1.0 / jnp.trace(sigma)
    sigma_n = sigma * r
    p = eye
    for _ in range(t):
        p = 1.5 * p - 0.5 * (p @ p @ p @ sigma_n)
    return p * jnp.sqrt(r)


def iter_norm_sigma_single(X, running_mean, running_wm, *, t=5, eps=1e-5,
                           momentum=0.1, training=True, block_bytes_target=None):
    """Mirrors IterNormSigmaSingle.forward (by_instance=False, dim=4).

    Returns (Xn, new_running_mean, new_running_wm)."""
    N, C, H, W = X.shape
    HW = H * W
    M = N * HW
    itemsize = jnp.dtype(X.dtype).itemsize

    vmem_limit = _vmem_limit_bytes()
    if block_bytes_target is None:
        block_bytes_target = int(max(1 << 20, min(4 << 20, vmem_limit // 16)))
    nb, tile = _choose_blocking(N, C, HW, itemsize, block_bytes_target)

    x = X.reshape(N, C, HW)                                   # free reshape, no transpose
    grid = (N // nb, HW // tile)
    x_spec = pl.BlockSpec((nb, C, tile), lambda n, h: (n, 0, h))

    if training:
        psum, pxxt = pl.pallas_call(
            _stats_kernel,
            grid=grid,
            in_specs=[x_spec],
            out_specs=(
                pl.BlockSpec((None, C, 1), lambda n, h: (n, 0, 0)),
                pl.BlockSpec((None, C, C), lambda n, h: (n, 0, 0)),
            ),
            out_shape=(
                jax.ShapeDtypeStruct((grid[0], C, 1), jnp.float32),
                jax.ShapeDtypeStruct((grid[0], C, C), jnp.float32),
            ),
            compiler_params=pltpu.CompilerParams(
                dimension_semantics=("parallel", "arbitrary"),
                vmem_limit_bytes=vmem_limit),
            cost_estimate=pl.CostEstimate(
                flops=2 * C * (C + 1) * M, transcendentals=0,
                bytes_accessed=C * M * itemsize + 4 * grid[0] * C * (C + 1)),
        )(x)
        sum_x = jnp.sum(psum, axis=0)                         # (C, 1) — tiny partial reduce
        xxt = jnp.sum(pxxt, axis=0)                           # (C, C)
        mean = sum_x * (1.0 / M)
        eye = jnp.eye(C, dtype=jnp.float32)
        # eps*I + (1/M) * sum((x-mean)(x-mean)^T) == eps*I + xx^T/M - mean mean^T
        sigma = eps * eye + xxt * (1.0 / M) - mean @ mean.T
    else:
        mean = running_mean.astype(jnp.float32)
        sigma = running_wm.astype(jnp.float32)

    wm = _newton_schulz(sigma, t)                             # (C, C), f32
    bias = wm @ mean                                          # (C, 1), f32 (fused centering)
    wm_in = wm.astype(X.dtype)                                # MXU-native dtype, no in-kernel upcast

    # If xprof shows exposed DMA here, bump x/out specs to pipeline_mode=pl.Buffered(3).
    xn = pl.pallas_call(
        _whiten_kernel,
        grid=grid,
        in_specs=[
            pl.BlockSpec((C, C), lambda n, h: (0, 0)),
            pl.BlockSpec((C, 1), lambda n, h: (0, 0)),
            x_spec,
        ],
        out_specs=pl.BlockSpec((nb, C, tile), lambda n, h: (n, 0, h)),
        out_shape=jax.ShapeDtypeStruct((N, C, HW), X.dtype),
        compiler_params=pltpu.CompilerParams(
            dimension_semantics=("parallel", "parallel"),
            vmem_limit_bytes=vmem_limit),
        cost_estimate=pl.CostEstimate(
            flops=2 * C * C * M, transcendentals=0,
            bytes_accessed=2 * C * M * itemsize),
    )(wm_in, bias, x)

    Xn = xn.reshape(N, C, H, W)                               # free reshape back

    # Running-buffer EMA updates (PyTorch does these in-place via .copy_; here
    # they are returned as new arrays).
    if training:
        new_running_mean = momentum * mean + (1.0 - momentum) * running_mean
        new_running_wm = momentum * sigma + (1.0 - momentum) * running_wm
    else:
        new_running_mean = running_mean
        new_running_wm = running_wm

    return Xn, new_running_mean, new_running_wm


def _reference(X, t=5, eps=1e-5):
    """Pure-JAX reference of the training forward pass (matches the PyTorch math)."""
    N, C, H, W = X.shape
    M = N * H * W
    x = jnp.transpose(X, (1, 0, 2, 3)).reshape(C, M).astype(jnp.float32)
    mean = jnp.mean(x, axis=1, keepdims=True)
    xc = x - mean
    eye = jnp.eye(C, dtype=jnp.float32)
    sigma = eps * eye + (xc @ xc.T) / M
    r = 1.0 / jnp.trace(sigma)
    sigma_n = sigma * r
    p = eye
    for _ in range(t):
        p = 1.5 * p - 0.5 * (p @ p @ p @ sigma_n)
    wm = p * jnp.sqrt(r)
    xn = wm @ xc
    return jnp.transpose(xn.reshape(C, N, H, W), (1, 0, 2, 3))


if __name__ == "__main__":
    # Module config: IterNormSigmaSingle(num_features=8, t=5, eps=1e-5, momentum=0.1)
    num_features = 8
    t, eps, momentum = 5, 1e-5, 0.1

    # Deterministic buffers per __init__: running_mean = zeros(C,1), running_wm = eye(C)
    running_mean = jnp.zeros((num_features, 1), dtype=jnp.float32)
    running_wm = jnp.eye(num_features, dtype=jnp.float32)

    # Deterministic small input (NCHW), consistent with dim=4.
    key = jax.random.PRNGKey(0)
    X = jax.random.normal(key, (2, num_features, 16, 16), dtype=jnp.float32)

    # 1) Default bytes-budgeted blocking (whole problem in one grid step here).
    Xn, new_rm, new_rwm = iter_norm_sigma_single(
        X, running_mean, running_wm,
        t=t, eps=eps, momentum=momentum, training=True)
    jax.block_until_ready((Xn, new_rm, new_rwm))

    Xn_ref = _reference(X, t=t, eps=eps)
    assert Xn.shape == X.shape
    assert jnp.allclose(Xn, Xn_ref, rtol=1e-3, atol=1e-3)

    # 2) Force a multi-step grid (tiny block target) to exercise the
    #    accumulate-across-HW and per-N-block partial-reduction paths.
    Xn2, _, _ = iter_norm_sigma_single(
        X, running_mean, running_wm,
        t=t, eps=eps, momentum=momentum, training=True, block_bytes_target=4096)
    jax.block_until_ready(Xn2)
    assert jnp.allclose(Xn2, Xn_ref, rtol=1e-3, atol=1e-3)

    print("KERNEL_OK")
</pallas_src>

<mosaic_0001>
module attributes {stable_mosaic.version = 11 : i64} {
  func.func @_stats_kernel(%arg0: i32, %arg1: i32, %arg2: memref<2x8x256xf32, #tpu.memory_space<vmem>>, %arg3: memref<1x8x1xf32, #tpu.memory_space<vmem>>, %arg4: memref<1x8x8xf32, #tpu.memory_space<vmem>>) attributes {dimension_semantics = [#tpu.dimension_semantics<parallel>, #tpu.dimension_semantics<arbitrary>], iteration_bounds = array<i64: 1, 1>, scalar_prefetch = 0 : i64, scratch_operands = 0 : i64, tpu.core_type = #tpu.core_type<tc>, window_params = [{transform_indices = @transform_0, window_bounds = array<i64: 2, 8, 256>}, {transform_indices = @transform_1, window_bounds = array<i64: 1, 8, 1>}, {transform_indices = @transform_2, window_bounds = array<i64: 1, 8, 8>}]} {
    %c0_i32 = arith.constant 0 : i32
    %0 = arith.cmpi eq, %arg1, %c0_i32 : i32
    %1 = arith.extui %0 : i1 to i32
    %c0_i32_0 = arith.constant 0 : i32
    %2 = arith.cmpi ne, %1, %c0_i32_0 : i32
    scf.if %2 {
      %cst_19 = arith.constant 0.000000e+00 : f32
      %21 = vector.broadcast %cst_19 : f32 to vector<8x1xf32>
      %c0_20 = arith.constant 0 : index
      %c0_21 = arith.constant 0 : index
      %c0_22 = arith.constant 0 : index
      %22 = vector.load %arg3[%c0_20, %c0_21, %c0_22] : memref<1x8x1xf32, #tpu.memory_space<vmem>>, vector<1x8x1xf32>
      %23 = vector.shape_cast %22 : vector<1x8x1xf32> to vector<8x1xf32>
      %24 = vector.shape_cast %21 : vector<8x1xf32> to vector<1x8x1xf32>
      tpu.vector_store %arg3[%c0_20, %c0_21, %c0_22], %24 {strides = array<i32>} : memref<1x8x1xf32, #tpu.memory_space<vmem>>, vector<1x8x1xf32>,
      %cst_23 = arith.constant 0.000000e+00 : f32
      %25 = vector.broadcast %cst_23 : f32 to vector<8x8xf32>
      %c0_24 = arith.constant 0 : index
      %c0_25 = arith.constant 0 : index
      %c0_26 = arith.constant 0 : index
      %26 = vector.load %arg4[%c0_24, %c0_25, %c0_26] : memref<1x8x8xf32, #tpu.memory_space<vmem>>, vector<1x8x8xf32>
      %27 = vector.shape_cast %26 : vector<1x8x8xf32> to vector<8x8xf32>
      %28 = vector.shape_cast %25 : vector<8x8xf32> to vector<1x8x8xf32>
      tpu.vector_store %arg4[%c0_24, %c0_25, %c0_26], %28 {strides = array<i32>} : memref<1x8x8xf32, #tpu.memory_space<vmem>>, vector<1x8x8xf32>,
    } else {
    }
    %c0 = arith.constant 0 : index
    %c0_1 = arith.constant 0 : index
    %c0_2 = arith.constant 0 : index
    %3 = vector.load %arg2[%c0, %c0_1, %c0_2] : memref<2x8x256xf32, #tpu.memory_space<vmem>>, vector<2x8x256xf32>
    %cst = arith.constant 1.000000e+00 : f32
    %4 = vector.broadcast %cst : f32 to vector<2x256x1xf32>
    %cst_3 = arith.constant dense<0.000000e+00> : vector<2x8x1xf32>
    %5 = tpu.matmul %3, %4, %cst_3 {dimension_numbers = #tpu.dot_dimension_numbers<[2], [1], [1], [2], [0, 0, 0, 1, 1, 2], [0], [0]>} : vector<2x8x256xf32>, vector<2x256x1xf32>, vector<2x8x1xf32> -> vector<2x8x1xf32>
    %cst_4 = arith.constant dense<0.000000e+00> : vector<2x8x8xf32>
    %6 = tpu.matmul %3, %3, %cst_4 {dimension_numbers = #tpu.dot_dimension_numbers<[2], [2], [1], [1], [0, 0, 0, 1, 1, 1], [0], [0]>} : vector<2x8x256xf32>, vector<2x8x256xf32>, vector<2x8x8xf32> -> vector<2x8x8xf32>
    %c0_5 = arith.constant 0 : index
    %c0_6 = arith.constant 0 : index
    %c0_7 = arith.constant 0 : index
    %7 = vector.load %arg3[%c0_5, %c0_6, %c0_7] : memref<1x8x1xf32, #tpu.memory_space<vmem>>, vector<1x8x1xf32>
    %8 = vector.shape_cast %7 : vector<1x8x1xf32> to vector<8x1xf32>
    %cst_8 = arith.constant dense<0.000000e+00> : vector<8x1xf32>
    %9 = vector.multi_reduction <add>, %5, %cst_8 [0] : vector<2x8x1xf32> to vector<8x1xf32>
    %10 = arith.addf %8, %9 : vector<8x1xf32>
    %c0_9 = arith.constant 0 : index
    %c0_10 = arith.constant 0 : index
    %c0_11 = arith.constant 0 : index
    %11 = vector.load %arg3[%c0_9, %c0_10, %c0_11] : memref<1x8x1xf32, #tpu.memory_space<vmem>>, vector<1x8x1xf32>
    %12 = vector.shape_cast %11 : vector<1x8x1xf32> to vector<8x1xf32>
    %13 = vector.shape_cast %10 : vector<8x1xf32> to vector<1x8x1xf32>
    tpu.vector_store %arg3[%c0_9, %c0_10, %c0_11], %13 {strides = array<i32>} : memref<1x8x1xf32, #tpu.memory_space<vmem>>, vector<1x8x1xf32>,
    %c0_12 = arith.constant 0 : index
    %c0_13 = arith.constant 0 : index
    %c0_14 = arith.constant 0 : index
    %14 = vector.load %arg4[%c0_12, %c0_13, %c0_14] : memref<1x8x8xf32, #tpu.memory_space<vmem>>, vector<1x8x8xf32>
    %15 = vector.shape_cast %14 : vector<1x8x8xf32> to vector<8x8xf32>
    %cst_15 = arith.constant dense<0.000000e+00> : vector<8x8xf32>
    %16 = vector.multi_reduction <add>, %6, %cst_15 [0] : vector<2x8x8xf32> to vector<8x8xf32>
    %17 = arith.addf %15, %16 : vector<8x8xf32>
    %c0_16 = arith.constant 0 : index
    %c0_17 = arith.constant 0 : index
    %c0_18 = arith.constant 0 : index
    %18 = vector.load %arg4[%c0_16, %c0_17, %c0_18] : memref<1x8x8xf32, #tpu.memory_space<vmem>>, vector<1x8x8xf32>
    %19 = vector.shape_cast %18 : vector<1x8x8xf32> to vector<8x8xf32>
    %20 = vector.shape_cast %17 : vector<8x8xf32> to vector<1x8x8xf32>
    tpu.vector_store %arg4[%c0_16, %c0_17, %c0_18], %20 {strides = array<i32>} : memref<1x8x8xf32, #tpu.memory_space<vmem>>, vector<1x8x8xf32>,
    return
  }
  func.func @transform_0(%arg0: i32, %arg1: i32) -> (i32, i32, i32) {
    %c0_i32 = arith.constant 0 : i32
    %c0_i32_0 = arith.constant 0 : i32
    return %arg0, %c0_i32, %arg1 : i32, i32, i32
  }
  func.func @transform_1(%arg0: i32, %arg1: i32) -> (i32, i32, i32) {
    %c0_i32 = arith.constant 0 : i32
    %c0_i32_0 = arith.constant 0 : i32
    %c0_i32_1 = arith.constant 0 : i32
    return %arg0, %c0_i32, %c0_i32_0 : i32, i32, i32
  }
  func.func @transform_2(%arg0: i32, %arg1: i32) -> (i32, i32, i32) {
    %c0_i32 = arith.constant 0 : i32
    %c0_i32_0 = arith.constant 0 : i32
    %c0_i32_1 = arith.constant 0 : i32
    return %arg0, %c0_i32, %c0_i32_0 : i32, i32, i32
  }
}

</mosaic_0001>

<bundles_post_ra>
// kernel: tpu_custom_call.1
= control target key start
LH: loop header
LB: loop body
LE: loop exit
PB: predicated region body
PF: predicated region fallthrough
CT: control target
= control target key end

     0   :  { %8 = vsyncpa [#allocation3], 0  ;;  %s608_s0 = inlined_call_operand.hbm [shape: f32[2,8,256], index: 0, kind: input, shape index: {}]   ;;  %s609_s1 = inlined_call_operand.hbm [shape: f32[1,8,1], index: 1, kind: output, shape index: {0}]   ;;  %s610_s2 = inlined_call_operand.hbm [shape: f32[1,8,8], index: 2, kind: output, shape index: {1}]  }
   0x1   :  { %9 = vsyncpa [#allocation4], 0 }
   0x2   :  { %10 = vsyncpa [#allocation7], 0  ;;  %s542_s9 = smov [#allocation2]   ;;  %s470_s13 = scalar_lea.hbm %s608_s0, 512 }
   0x3   :  { %s16_s10 = sshll.u32 %s542_s9, 4  ;;  %p471_p0 = scmp.ne.s32.totalorder %s608_s0, %s470_s13  ;;  %s17_s10 = int_to_ptr.vmem [resolvable:$true] %s16_s10 }
   0x4   :  { %p474_p1 = scmp.lt.u32.totalorder %s470_s13, %s608_s0 }
   0x6   :  { %p476_p2 = pnand %p474_p1, %p471_p0 }
   0x8   :  { %479 = shalt.err (!%p476_p2)
}
   0x9   :  { %s480_s18 = scalar_lea.vmem %s17_s10, 512  ;;  %p485_p4 = scmp.lt.s32.totalorder %s17_s10, %s17_s10 }
   0xa   :  { %p481_p3 = scmp.ne.s32.totalorder %s17_s10, %s480_s18  ;;  %p486_p5 = scmp.lt.s32.totalorder %s480_s18, %s480_s18 }
   0xc   :  { %p487_p6 = por %p486_p5, %p485_p4 }
   0xe   :  { %p488_p7 = pnand %p487_p6, %p481_p3 }
  0x10   :  { %491 = shalt.err (!%p488_p7)
}
  0x11   :  { %s543_s19 = smov 256   ;;  %s544_s20 = smov 16  }
  0x12   :  { %22 = dma.hbm_to_vmem [thread:$0]  %s608_s0, 512, %s17_s10, [#allocation3], %s543_s19, %s543_s19, %s544_s20  }
  0x13   :  { %536 = dma.done.wait [#allocation3], 512  }
  0x14   :  { %537 = vsyncadd [#allocation3], 4294966784  ;;  %v545_v0 = vmov 1.0|1.0   ;;  %v35_v1 = vld [vmem:[#allocation2 + $0x8] sm:$0xff]  ;;  %v37_v2 = vld [vmem:[#allocation2 + $0x18] sm:$0xff] }
  0x15   :  { %431 = vmatprep.subr.bf16.mxu0 %v545_v0  ;;  %447 = vmatprep.subr.bf16.mxu1 %v545_v0  ;;  %v34_v3 = vld [vmem:[#allocation2] sm:$0xff]  ;;  %v36_v4 = vld [vmem:[#allocation2 + $0x10] sm:$0xff]  ;;  %vm30_vm0 = vcmask 7168   ;;  %v546_v5 = vmov 0.0   ;;  %vm32_vm1 = vcmask 64512   ;;  %s547_s0 = smov [#allocation5]  }
  0x16   :  { %432 = vmatpush3.bf16.msra.mxu0 %v545_v0  ;;  %448 = vmatpush3.bf16.msra.mxu1 %v545_v0  ;;  %31 = vst.msk [vmem:[#allocation5] sm:$0xff] %vm30_vm0, %v546_v5  ;;  %s338_s23 = sshll.u32 %s547_s0, 4  ;;  %s548_s24 = smov [#allocation6]   ;;  %s339_s23 = int_to_ptr.vmem [resolvable:$true] %s338_s23 }
  0x17   :  { %433 = vmatprep.subr.bf16.mxu0 %v545_v0  ;;  %449 = vmatprep.subr.bf16.mxu1 %v545_v0  ;;  %33 = vst.msk [vmem:[#allocation6] sm:$0xff] %vm32_vm1, %v546_v5  ;;  %s348_s25 = sshll.u32 %s548_s24, 4  ;;  %s492_s26 = scalar_lea.vmem %s339_s23, 128  ;;  %s349_s25 = int_to_ptr.vmem [resolvable:$true] %s348_s25 }
  0x18   :  { %102 = vmatprep.mubr.f32.mxu0 %v35_v1  ;;  %172 = vmatprep.mubr.f32.mxu1 %v37_v2  ;;  %p493_p8 = scmp.ne.s32.totalorder %s339_s23, %s492_s26  ;;  %p497_p9 = scmp.lt.s32.totalorder %s339_s23, %s339_s23 }
  0x19   :  { %p498_p10 = scmp.lt.s32.totalorder %s492_s26, %s492_s26 }
  0x1a   :  { %434 = vmatpush3.bf16.msra.mxu0 %v545_v0  ;;  %450 = vmatpush3.bf16.msra.mxu1 %v545_v0 }
  0x1b   :  { %435 = vmatprep.subr.bf16.mxu0 %v545_v0  ;;  %451 = vmatprep.subr.bf16.mxu1 %v545_v0  ;;  %p499_p11 = por %p498_p10, %p497_p9 }
  0x1d   :  { %v318_v13 = vld [vmem:[#allocation5] sm:$0xff]  ;;  %p500_p12 = pnand %p499_p11, %p493_p8 }
  0x1e   :  { %436 = vmatpush3.bf16.msra.mxu0 %v545_v0  ;;  %452 = vmatpush3.bf16.msra.mxu1 %v545_v0  ;;  %v325_v19 = vld [vmem:[#allocation6] sm:$0xff] }
  0x1f   :  { %437 = vmatprep.subr.bf16.mxu0 %v545_v0  ;;  %453 = vmatprep.subr.bf16.mxu1 %v545_v0 }
  0x22   :  { %438 = vmatpush3.bf16.msra.mxu0 %v545_v0  ;;  %454 = vmatpush3.bf16.msra.mxu1 %v545_v0 }
  0x23   :  { %439 = vmatprep.subr.bf16.mxu0 %v545_v0  ;;  %455 = vmatprep.subr.bf16.mxu1 %v545_v0 }
  0x26   :  { %440 = vmatpush3.bf16.msra.mxu0 %v545_v0  ;;  %456 = vmatpush3.bf16.msra.mxu1 %v545_v0 }
  0x27   :  { %441 = vmatprep.subr.bf16.mxu0 %v545_v0  ;;  %457 = vmatprep.subr.bf16.mxu1 %v545_v0 }
  0x2a   :  { %442 = vmatpush3.bf16.msra.mxu0 %v545_v0  ;;  %458 = vmatpush3.bf16.msra.mxu1 %v545_v0 }
  0x2b   :  { %443 = vmatprep.subr.bf16.mxu0 %v545_v0  ;;  %459 = vmatprep.subr.bf16.mxu1 %v545_v0 }
  0x2e   :  { %444 = vmatpush3.bf16.msra.mxu0 %v545_v0  ;;  %460 = vmatpush3.bf16.msra.mxu1 %v545_v0 }
  0x2f   :  { %445 = vmatprep.subr.bf16.mxu0 %v545_v0  ;;  %461 = vmatprep.subr.bf16.mxu1 %v545_v0 }
  0x32   :  { %446 = vmatpush3.bf16.msra.mxu0 %v545_v0  ;;  %462 = vmatpush3.bf16.msra.mxu1 %v545_v0 }
  0x33   :  { %178 = vmatprep.subr.mxu0 %v35_v1  ;;  %248 = vmatprep.subr.mxu1 %v37_v2 }
  0x35   :  { %103 = vmatmul.mubr.f32.vlgmr.msra.gmra.mrb[0].mxu0 %v34_v3  ;;  %173 = vmatmul.mubr.f32.vlgmr.msra.gmra.mrb[0].mxu1 %v36_v4 }
  0x36   :  { %242 = vmatprep.mubr.f32.mxu0 %v35_v1  ;;  %312 = vmatprep.mubr.f32.mxu1 %v37_v2 }
  0x3b   :  { %179 = vmatpush1.xpose.msra.mxu0 %v34_v3  ;;  %249 = vmatpush1.xpose.msra.mxu1 %v36_v4 }
  0x3e   :  { %243 = vmatmul.mubr.f32.vlgmr.msra.gmra.mrb[2].mxu0 %v34_v3  ;;  %313 = vmatmul.mubr.f32.vlgmr.msra.gmra.mrb[2].mxu1 %v36_v4 }
 0x108   :  { %v393_v6 = vpop.f32.mrb[0].mxu0  ;;  %v428_v7 = vpop.f32.mrb[0].mxu1 }
 0x109   :  { %v394_v8 = vpop.f32.mrb[1].mxu0  ;;  %v429_v9 = vpop.f32.mrb[1].mxu1 }
 0x10a   :  { %v395_v10 = vadd.f32 %v394_v8, %v393_v6  ;;  %v430_v11 = vadd.f32 %v429_v9, %v428_v7 }
 0x10c   :  { %v320_v12 = vsel %vm30_vm0, %v395_v10, 0.0  ;;  %v321_v14 = vsel %vm30_vm0, %v430_v11, 0.0 }
 0x10d   :  { %v322_v15 = vadd.f32 %v321_v14, %v320_v12 }
 0x10f   :  { %v323_v16 = vadd.f32 %v322_v15, %v318_v13 }
 0x111   :  { %324 = vst.msk [vmem:[#allocation5] sm:$0xff] %vm30_vm0, %v323_v16  ;;  %v244_v17 = vpop.f32.mrb[2].mxu0  ;;  %v314_v18 = vpop.f32.mrb[2].mxu1 }
 0x112   :  { %v327_v20 = vsel %vm32_vm1, %v244_v17, 0.0  ;;  %v328_v21 = vsel %vm32_vm1, %v314_v18, 0.0  ;;  %v246_v22 = vpop.f32.mrb[3].mxu0  ;;  %v316_v23 = vpop.f32.mrb[3].mxu1 }
 0x113   :  { %503 = shalt.err (!%p500_p12)
}
 0x114   :  { %s504_s29 = scalar_lea.hbm %s609_s1, 128 }
 0x115   :  { %p505_p13 = scmp.ne.s32.totalorder %s609_s1, %s504_s29  ;;  %p508_p0 = scmp.lt.u32.totalorder %s504_s29, %s609_s1 }
 0x117   :  { %p510_p1 = pnand %p508_p0, %p505_p13 }
 0x119   :  { %513 = shalt.err (!%p510_p1)
}
 0x11a   :  { %341 = dma.vmem_to_hbm [thread:$0]  %s339_s23, 128, %s609_s1, [#allocation4]   ;;  %v329_v24 = vadd.f32 %v328_v21, %v327_v20 }
 0x11b   :  { %s514_s8 = scalar_lea.vmem %s349_s25, 128  ;;  %p519_p3 = scmp.lt.s32.totalorder %s349_s25, %s349_s25 }
 0x11c   :  { %v330_v25 = vadd.f32 %v329_v24, %v325_v19  ;;  %p515_p2 = scmp.ne.s32.totalorder %s349_s25, %s514_s8  ;;  %p520_p4 = scmp.lt.s32.totalorder %s514_s8, %s514_s8 }
 0x11e   :  { %331 = vst.msk [vmem:[#allocation6] sm:$0xff] %vm32_vm1, %v330_v25  ;;  %p521_p5 = por %p520_p4, %p519_p3 }
 0x120   :  { %p522_p6 = pnand %p521_p5, %p515_p2 }
 0x122   :  { %525 = shalt.err (!%p522_p6)
}
 0x123   :  { %s526_s11 = scalar_lea.hbm %s610_s2, 128 }
 0x124   :  { %p527_p7 = scmp.ne.s32.totalorder %s610_s2, %s526_s11  ;;  %p530_p8 = scmp.lt.u32.totalorder %s526_s11, %s610_s2 }
 0x126   :  { %p532_p9 = pnand %p530_p8, %p527_p7 }
 0x128   :  { %535 = shalt.err (!%p532_p9)
}
 0x129   :  { %351 = dma.vmem_to_hbm [thread:$0]  %s349_s25, 128, %s610_s2, [#allocation7]  }
 0x12a   :  { %538 = dma.done.wait [#allocation4], 128  }
 0x12b   :  { %539 = vsyncadd [#allocation4], 4294967168 }
 0x12c   :  { %540 = dma.done.wait [#allocation7], 128  }
 0x12d   :  { %541 = vsyncadd [#allocation7], 4294967168 }
 0x12e   :  { %358 = vsyncpa [#allocation3], 1 }
 0x12f   :  { %359 = vsyncpa [#allocation4], 1 }
 0x130   :  { %360 = vsyncpa [#allocation7], 1 }

</bundles_post_ra>
